<compile_context>
chip_gen: v7x
topology: tpu7x:2x2x1
jax: 0.10.0
libtpu: 0.0.40
codegen_flags: <defaults>
</compile_context>

<pallas_src>
import functools

import jax
import jax.numpy as jnp
import numpy as np
from jax.experimental import pallas as pl
from jax.experimental.pallas import tpu as pltpu


# ----------------------------------------------------------------------------
# Helpers
# ----------------------------------------------------------------------------
def _round_up(x, m):
    return (x + m - 1) // m * m


def _pad2d(x, rows, cols):
    return jnp.pad(x, ((0, rows - x.shape[0]), (0, cols - x.shape[1])))


def _vmem_cap_bytes():
    try:
        return int(pltpu.get_tpu_info().vmem_capacity_bytes)
    except Exception:
        return 64 * 2**20          # conservative fallback (v7x per-TC VMEM)


def _choose_tile(n, target):
    """Pick a tile (multiple of 128, <= target) and the padded extent for n."""
    n128 = _round_up(max(n, 1), 128)
    if n128 >= 8 * target:
        # Large dim: just round up to the target (waste < 12.5%), big tiles win.
        return target, _round_up(n128, target)
    best = 128
    t = 128
    while t <= min(target, n128):
        if n128 % t == 0:
            best = t
        t += 128
    return best, n128


# ----------------------------------------------------------------------------
# One propagation half-step:  out = (1-alpha) * A @ E_src + alpha * E0_dst
#   A      : (dst_pad, src_pad) bf16, streamed as (tm, tk) tiles
#   E_src  : (src_pad, dim_pad) bf16, resident in VMEM (single-buffered)
#   E0_dst : (dst_pad, dim_pad) f32,  (tm, dim_pad) blocks (epilogue only)
#   out    : (dst_pad, dim_pad) f32,  accumulated in place across the k axis
# ----------------------------------------------------------------------------
def _prop_half_kernel(a_ref, esrc_ref, e0_ref, out_ref, *, alpha, tk):
    k = pl.program_id(1)
    n_k = pl.num_programs(1)

    @pl.when(k == 0)
    def _():
        out_ref[...] = jnp.zeros_like(out_ref)

    k_off = pl.multiple_of(k * tk, tk)
    e_chunk = esrc_ref[pl.ds(k_off, tk), :]               # (tk, dim_pad) bf16
    out_ref[...] += jnp.dot(a_ref[...], e_chunk,
                            preferred_element_type=jnp.float32)

    @pl.when(k == n_k - 1)
    def _():
        out_ref[...] = (1.0 - alpha) * out_ref[...] + alpha * e0_ref[...]


def _propagate_half(a_bf16, e_src_bf16, e0_dst, *, alpha, tm, tk):
    dst_pad, src_pad = a_bf16.shape
    src_pad2, dim_pad = e_src_bf16.shape
    assert src_pad == src_pad2 and e0_dst.shape == (dst_pad, dim_pad)
    assert dst_pad % tm == 0 and src_pad % tk == 0 and dim_pad % 128 == 0

    grid = (dst_pad // tm, src_pad // tk)

    need = (2 * tm * tk * 2              # A tiles (bf16, double-buffered)
            + src_pad * dim_pad * 2      # resident E_src (bf16, single-buffered)
            + 2 * tm * dim_pad * 4       # E0 blocks (f32, double-buffered)
            + 2 * tm * dim_pad * 4       # output blocks (f32, double-buffered)
            + (2 << 20))                 # headroom
    cap = _vmem_cap_bytes()
    vmem_bytes = int(min(max(need, 32 * 2**20), cap - (4 << 20)))
    # TODO(synk): for graphs where the resident E_src (src_pad*dim_pad*2 B)
    # no longer fits VMEM, stream E_src as (tk, dim_pad) blocks instead.

    kernel = functools.partial(_prop_half_kernel, alpha=alpha, tk=tk)
    return pl.pallas_call(
        kernel,
        out_shape=jax.ShapeDtypeStruct((dst_pad, dim_pad), jnp.float32),
        grid_spec=pltpu.PrefetchScalarGridSpec(
            num_scalar_prefetch=0,
            grid=grid,
            in_specs=[
                pl.BlockSpec((tm, tk), lambda i, k: (i, k)),              # A tile
                pl.BlockSpec((src_pad, dim_pad), lambda i, k: (0, 0),     # E_src
                             pipeline_mode=pl.Buffered(1)),
                pl.BlockSpec((tm, dim_pad), lambda i, k: (i, 0)),         # E0
            ],
            out_specs=pl.BlockSpec((tm, dim_pad), lambda i, k: (i, 0))),
        compiler_params=pltpu.CompilerParams(
            dimension_semantics=("parallel", "arbitrary"),
            vmem_limit_bytes=vmem_bytes),
    )(a_bf16, e_src_bf16, e0_dst)


def propagate(r_hat, rt_hat, eu0, ei0, *, K, alpha, t_u, t_i):
    eu, ei = eu0, ei0
    for _ in range(K):
        eu_b = eu.astype(jnp.bfloat16)   # cheap per-step cast (E traffic << A)
        ei_b = ei.astype(jnp.bfloat16)
        eu = _propagate_half(r_hat, ei_b, eu0, alpha=alpha, tm=t_u, tk=t_i)
        ei = _propagate_half(rt_hat, eu_b, ei0, alpha=alpha, tm=t_i, tk=t_u)
    return eu, ei


# ----------------------------------------------------------------------------
# Batched gather + dot-product kernel (forward scoring)
#   bt (user,item) pairs per grid step; rows gathered with manual DMA.
# ----------------------------------------------------------------------------
def _gather_dot_kernel(u_ids_ref, it_ids_ref, eu_hbm, ei_hbm, out_ref,
                       u_buf, i_buf, sems, *, bt):
    g = pl.program_id(0)
    base = g * bt

    copies = []
    for r in range(bt):                                   # static unroll
        cu = pltpu.make_async_copy(eu_hbm.at[u_ids_ref[base + r]],
                                   u_buf.at[r], sems.at[0, r])
        ci = pltpu.make_async_copy(ei_hbm.at[it_ids_ref[base + r]],
                                   i_buf.at[r], sems.at[1, r])
        cu.start()
        ci.start()
        copies.append((cu, ci))
    for cu, ci in copies:
        cu.wait()
        ci.wait()

    prod = u_buf[...] * i_buf[...]                        # (bt, dim_pad) f32
    gamma = jnp.sum(prod, axis=-1, keepdims=True)         # (bt, 1)
    out_ref[...] = jnp.broadcast_to(gamma, out_ref.shape)  # lane-dense store


def gather_dot(e_users_pad, e_items_pad, users_idx, items_idx, *, bt=8):
    b = int(users_idx.shape[0])
    dim_pad = e_users_pad.shape[1]
    b_pad = _round_up(max(b, 1), bt)
    u_ids = jnp.zeros((b_pad,), jnp.int32).at[:b].set(users_idx.astype(jnp.int32))
    it_ids = jnp.zeros((b_pad,), jnp.int32).at[:b].set(items_idx.astype(jnp.int32))

    kernel = functools.partial(_gather_dot_kernel, bt=bt)
    out = pl.pallas_call(
        kernel,
        out_shape=jax.ShapeDtypeStruct((b_pad, dim_pad), jnp.float32),
        grid_spec=pltpu.PrefetchScalarGridSpec(
            num_scalar_prefetch=2,
            grid=(b_pad // bt,),
            in_specs=[
                pl.BlockSpec(memory_space=pl.ANY),        # user embeddings (HBM)
                pl.BlockSpec(memory_space=pl.ANY),        # item embeddings (HBM)
            ],
            out_specs=pl.BlockSpec((bt, dim_pad),
                                   lambda g, u_ids, it_ids: (g, 0)),
            scratch_shapes=[
                pltpu.VMEM((bt, dim_pad), jnp.float32),
                pltpu.VMEM((bt, dim_pad), jnp.float32),
                pltpu.SemaphoreType.DMA((2, bt)),
            ]),
        compiler_params=pltpu.CompilerParams(
            dimension_semantics=("arbitrary",)),
    )(u_ids, it_ids, e_users_pad, e_items_pad)
    return out[:b, 0]


# ----------------------------------------------------------------------------
# GTN model wrapper
# ----------------------------------------------------------------------------
class GTN:
    """LightGCN-style GTN: embedding tables + K-step APPNP propagation + dot scoring."""

    def __init__(self, user_emb, item_emb, adj_norm, *, K, alpha, tile=1024):
        self.num_users, self.dim = user_emb.shape
        self.num_items = item_emb.shape[0]
        self.K = K
        self.alpha = alpha

        # Adaptive tiles (<= `tile`, multiples of 128) and padded extents.
        self.t_u, self.u_pad = _choose_tile(self.num_users, tile)
        self.t_i, self.i_pad = _choose_tile(self.num_items, tile)
        self.dim_pad = _round_up(self.dim, 128)

        self.eu0 = _pad2d(user_emb.astype(jnp.float32), self.u_pad, self.dim_pad)
        self.ei0 = _pad2d(item_emb.astype(jnp.float32), self.i_pad, self.dim_pad)

        # Bipartite structure: only the user-item block R_hat (and its transpose)
        # of the normalized adjacency is nonzero -> store/stream only those (bf16).
        r_hat = adj_norm[:self.num_users,
                         self.num_users:self.num_users + self.num_items]
        r_hat = r_hat.astype(jnp.float32)
        self.r_hat = _pad2d(r_hat, self.u_pad, self.i_pad).astype(jnp.bfloat16)
        self.rt_hat = _pad2d(r_hat.T, self.i_pad, self.u_pad).astype(jnp.bfloat16)
        # TODO(synk): edge dropout (__dropout/__dropout_x), bpr_loss and
        # getUserRating are training/eval-only paths and are not implemented.
        # TODO(synk): for realistic (<<1% dense) graphs use a block-sparse SpMM
        # (scalar-prefetched nonzero-tile lists); quantize R_hat to int8
        # (v5e/v6e) or fp8 (v7x) with per-tile scales for another ~2x.

    def _compute_padded(self):
        return propagate(self.r_hat, self.rt_hat, self.eu0, self.ei0,
                         K=self.K, alpha=self.alpha,
                         t_u=self.t_u, t_i=self.t_i)

    def computer(self):
        eu, ei = self._compute_padded()
        return eu[:self.num_users, :self.dim], ei[:self.num_items, :self.dim]

    def forward(self, users, items):
        eu_pad, ei_pad = self._compute_padded()
        users = jnp.clip(users.astype(jnp.int32), 0, self.num_users - 1)
        items = jnp.clip(items.astype(jnp.int32), 0, self.num_items - 1)
        return gather_dot(eu_pad, ei_pad, users, items)


# ----------------------------------------------------------------------------
# Pure-JAX reference (mirrors the kernel's bf16 data path)
# ----------------------------------------------------------------------------
def _reference_forward(r_hat_bf16, rt_hat_bf16, eu0, ei0, users, items, K, alpha):
    r = r_hat_bf16.astype(jnp.float32)
    rt = rt_hat_bf16.astype(jnp.float32)
    eu, ei = eu0, ei0
    for _ in range(K):
        eu_b = eu.astype(jnp.bfloat16).astype(jnp.float32)
        ei_b = ei.astype(jnp.bfloat16).astype(jnp.float32)
        eu_new = ((1.0 - alpha) * jnp.dot(r, ei_b,
                                          precision=jax.lax.Precision.HIGHEST)
                  + alpha * eu0)
        ei_new = ((1.0 - alpha) * jnp.dot(rt, eu_b,
                                          precision=jax.lax.Precision.HIGHEST)
                  + alpha * ei0)
        eu, ei = eu_new, ei_new
    u = eu[users]
    v = ei[items]
    return jnp.sum(u * v, axis=-1)


if __name__ == "__main__":
    key = jax.random.PRNGKey(0)
    k_graph, k_user, k_item, k_u_idx, k_i_idx = jax.random.split(key, 5)

    num_users, num_items, dim = 96, 160, 64
    K, alpha = 3, 0.15
    batch = 8
    n = num_users + num_items

    # Random implicit-feedback bipartite graph + symmetric normalization.
    r = (jax.random.uniform(k_graph, (num_users, num_items)) < 0.08).astype(jnp.float32)
    adj = jnp.zeros((n, n), jnp.float32)
    adj = adj.at[:num_users, num_users:].set(r)
    adj = adj.at[num_users:, :num_users].set(r.T)
    deg = jnp.maximum(adj.sum(axis=1), 1.0)
    d_inv_sqrt = 1.0 / jnp.sqrt(deg)
    a_hat = adj * d_inv_sqrt[:, None] * d_inv_sqrt[None, :]

    user_emb = 0.1 * jax.random.normal(k_user, (num_users, dim), jnp.float32)
    item_emb = 0.1 * jax.random.normal(k_item, (num_items, dim), jnp.float32)

    users = jax.random.randint(k_u_idx, (batch,), 0, num_users, jnp.int32)
    items = jax.random.randint(k_i_idx, (batch,), 0, num_items, jnp.int32)

    model = GTN(user_emb, item_emb, a_hat, K=K, alpha=alpha)
    gamma = model.forward(users, items)
    gamma = jax.block_until_ready(gamma)

    ref = _reference_forward(model.r_hat, model.rt_hat, model.eu0, model.ei0,
                             users, items, K, alpha)
    ref = jax.block_until_ready(ref)

    if not np.allclose(np.asarray(gamma), np.asarray(ref), rtol=5e-2, atol=5e-2):
        raise SystemExit(
            f"mismatch:\n got {np.asarray(gamma)}\n ref {np.asarray(ref)}")
    print("KERNEL_OK")
</pallas_src>

<mosaic_0001>
module attributes {stable_mosaic.version = 11 : i64} {
  func.func @_prop_half_kernel(%arg0: i32, %arg1: i32, %arg2: memref<128x256xbf16, #tpu.memory_space<vmem>>, %arg3: memref<256x128xbf16, #tpu.memory_space<vmem>>, %arg4: memref<128x128xf32, #tpu.memory_space<vmem>>, %arg5: memref<128x128xf32, #tpu.memory_space<vmem>>) attributes {dimension_semantics = [#tpu.dimension_semantics<parallel>, #tpu.dimension_semantics<arbitrary>], iteration_bounds = array<i64: 1, 1>, scalar_prefetch = 0 : i64, scratch_operands = 0 : i64, tpu.core_type = #tpu.core_type<tc>, window_params = [{transform_indices = @transform_0, window_bounds = array<i64: 128, 256>}, {pipeline_mode = #tpu.pipeline_mode<synchronous>, transform_indices = @transform_1, window_bounds = array<i64: 256, 128>}, {transform_indices = @transform_2, window_bounds = array<i64: 128, 128>}, {transform_indices = @transform_3, window_bounds = array<i64: 128, 128>}]} {
    %c0_i32 = arith.constant 0 : i32
    %0 = arith.cmpi eq, %arg1, %c0_i32 : i32
    %1 = arith.extui %0 : i1 to i32
    %c0_i32_0 = arith.constant 0 : i32
    %2 = arith.cmpi ne, %1, %c0_i32_0 : i32
    scf.if %2 {
      %cst_9 = arith.constant 0.000000e+00 : f32
      %15 = vector.broadcast %cst_9 : f32 to vector<128x128xf32>
      %c0_10 = arith.constant 0 : index
      %c0_11 = arith.constant 0 : index
      %16 = vector.load %arg5[%c0_10, %c0_11] : memref<128x128xf32, #tpu.memory_space<vmem>>, vector<128x128xf32>
      tpu.vector_store %arg5[%c0_10, %c0_11], %15 {strides = array<i32>} : memref<128x128xf32, #tpu.memory_space<vmem>>, vector<128x128xf32>,
    } else {
    }
    %c256_i32 = arith.constant 256 : i32
    %3 = arith.muli %arg1, %c256_i32 : i32
    %4 = tpu.assume_multiple %3, 256 : i32
    %5 = arith.index_cast %4 : i32 to index
    %c0 = arith.constant 0 : index
    %6 = vector.load %arg3[%5, %c0] : memref<256x128xbf16, #tpu.memory_space<vmem>>, vector<256x128xbf16>
    %c0_1 = arith.constant 0 : index
    %c0_2 = arith.constant 0 : index
    %7 = vector.load %arg5[%c0_1, %c0_2] : memref<128x128xf32, #tpu.memory_space<vmem>>, vector<128x128xf32>
    %c0_3 = arith.constant 0 : index
    %c0_4 = arith.constant 0 : index
    %8 = vector.load %arg2[%c0_3, %c0_4] : memref<128x256xbf16, #tpu.memory_space<vmem>>, vector<128x256xbf16>
    %cst = arith.constant dense<0.000000e+00> : vector<128x128xf32>
    %9 = tpu.matmul %8, %6, %cst {dimension_numbers = #tpu.dot_dimension_numbers<[1], [0], [0], [1], [0, 0, 1, 1], [], []>} : vector<128x256xbf16>, vector<256x128xbf16>, vector<128x128xf32> -> vector<128x128xf32>
    %10 = arith.addf %7, %9 : vector<128x128xf32>
    %c0_5 = arith.constant 0 : index
    %c0_6 = arith.constant 0 : index
    %11 = vector.load %arg5[%c0_5, %c0_6] : memref<128x128xf32, #tpu.memory_space<vmem>>, vector<128x128xf32>
    tpu.vector_store %arg5[%c0_5, %c0_6], %10 {strides = array<i32>} : memref<128x128xf32, #tpu.memory_space<vmem>>, vector<128x128xf32>,
    %c0_i32_7 = arith.constant 0 : i32
    %12 = arith.cmpi eq, %arg1, %c0_i32_7 : i32
    %13 = arith.extui %12 : i1 to i32
    %c0_i32_8 = arith.constant 0 : i32
    %14 = arith.cmpi ne, %13, %c0_i32_8 : i32
    scf.if %14 {
      %c0_9 = arith.constant 0 : index
      %c0_10 = arith.constant 0 : index
      %15 = vector.load %arg5[%c0_9, %c0_10] : memref<128x128xf32, #tpu.memory_space<vmem>>, vector<128x128xf32>
      %cst_11 = arith.constant 8.500000e-01 : f32
      %16 = vector.broadcast %cst_11 : f32 to vector<128x128xf32>
      %17 = arith.mulf %16, %15 : vector<128x128xf32>
      %c0_12 = arith.constant 0 : index
      %c0_13 = arith.constant 0 : index
      %18 = vector.load %arg4[%c0_12, %c0_13] : memref<128x128xf32, #tpu.memory_space<vmem>>, vector<128x128xf32>
      %cst_14 = arith.constant 1.500000e-01 : f32
      %19 = vector.broadcast %cst_14 : f32 to vector<128x128xf32>
      %20 = arith.mulf %19, %18 : vector<128x128xf32>
      %21 = arith.addf %17, %20 : vector<128x128xf32>
      %c0_15 = arith.constant 0 : index
      %c0_16 = arith.constant 0 : index
      %22 = vector.load %arg5[%c0_15, %c0_16] : memref<128x128xf32, #tpu.memory_space<vmem>>, vector<128x128xf32>
      tpu.vector_store %arg5[%c0_15, %c0_16], %21 {strides = array<i32>} : memref<128x128xf32, #tpu.memory_space<vmem>>, vector<128x128xf32>,
    } else {
    }
    return
  }
  func.func @transform_0(%arg0: i32, %arg1: i32) -> (i32, i32) {
    %c0_i32 = arith.constant 0 : i32
    return %arg0, %arg1 : i32, i32
  }
  func.func @transform_1(%arg0: i32, %arg1: i32) -> (i32, i32) {
    %c0_i32 = arith.constant 0 : i32
    %c0_i32_0 = arith.constant 0 : i32
    %c0_i32_1 = arith.constant 0 : i32
    return %c0_i32, %c0_i32_0 : i32, i32
  }
  func.func @transform_2(%arg0: i32, %arg1: i32) -> (i32, i32) {
    %c0_i32 = arith.constant 0 : i32
    %c0_i32_0 = arith.constant 0 : i32
    return %arg0, %c0_i32 : i32, i32
  }
  func.func @transform_3(%arg0: i32, %arg1: i32) -> (i32, i32) {
    %c0_i32 = arith.constant 0 : i32
    %c0_i32_0 = arith.constant 0 : i32
    return %arg0, %c0_i32 : i32, i32
  }
}

</mosaic_0001>

<bundles_post_ra>
// kernel: tpu_custom_call.1
= control target key start
LH: loop header
LB: loop body
LE: loop exit
PB: predicated region body
PF: predicated region fallthrough
CT: control target
= control target key end

     0   :  { %8 = vsyncpa [#allocation3], 0  ;;  %s910_s0 = inlined_call_operand.hbm [shape: bf16[128,256], index: 0, kind: input, shape index: {}]   ;;  %s911_s1 = inlined_call_operand.hbm [shape: bf16[256,128], index: 1, kind: input, shape index: {}]   ;;  %s912_s2 = inlined_call_operand.hbm [shape: f32[128,128], index: 2, kind: input, shape index: {}]   ;;  %s913_s3 = inlined_call_operand.hbm [shape: f32[128,128], index: 3, kind: output, shape index: {}]  }
   0x1   :  { %9 = vsyncpa [#allocation6], 0 }
   0x2   :  { %10 = vsyncpa [#allocation4], 0  ;;  %s825_s12 = smov [#allocation5]   ;;  %s731_s16 = scalar_lea.hbm %s911_s1, 2048 }
   0x3   :  { %s28_s13 = sshll.u32 %s825_s12, 4  ;;  %p732_p0 = scmp.ne.s32.totalorder %s911_s1, %s731_s16  ;;  %s29_s13 = int_to_ptr.vmem [resolvable:$true] %s28_s13 }
   0x4   :  { %p735_p1 = scmp.lt.u32.totalorder %s731_s16, %s911_s1 }
   0x6   :  { %p737_p2 = pnand %p735_p1, %p732_p0 }
   0x8   :  { %740 = shalt.err (!%p737_p2)
}
   0x9   :  { %s741_s21 = scalar_lea.vmem %s29_s13, 2048  ;;  %p746_p4 = scmp.lt.s32.totalorder %s29_s13, %s29_s13 }
   0xa   :  { %p742_p3 = scmp.ne.s32.totalorder %s29_s13, %s741_s21  ;;  %p747_p5 = scmp.lt.s32.totalorder %s741_s21, %s741_s21 }
   0xc   :  { %p748_p6 = por %p747_p5, %p746_p4 }
   0xe   :  { %p749_p7 = pnand %p748_p6, %p742_p3 }
  0x10   :  { %752 = shalt.err (!%p749_p7)
}
  0x11   :  { %s826_s22 = smov 64   ;;  %s827_s23 = smov 4  }
  0x12   :  { %34 = dma.hbm_to_vmem [thread:$0]  %s911_s1, 2048, %s29_s13, [#allocation6], %s826_s22, %s826_s22, %s827_s23  }
  0x13   :  { %s828_s26 = smov [#allocation2]   ;;  %s753_s30 = scalar_lea.hbm %s910_s0, 2048 }
  0x14   :  { %s16_s27 = sshll.u32 %s828_s26, 4  ;;  %p754_p8 = scmp.ne.s32.totalorder %s910_s0, %s753_s30  ;;  %s17_s27 = int_to_ptr.vmem [resolvable:$true] %s16_s27 }
  0x15   :  { %p757_p9 = scmp.lt.u32.totalorder %s753_s30, %s910_s0 }
  0x17   :  { %p759_p10 = pnand %p757_p9, %p754_p8 }
  0x19   :  { %762 = shalt.err (!%p759_p10)
}
  0x1a   :  { %s763_s8 = scalar_lea.vmem %s17_s27, 2048  ;;  %p768_p12 = scmp.lt.s32.totalorder %s17_s27, %s17_s27 }
  0x1b   :  { %p764_p11 = scmp.ne.s32.totalorder %s17_s27, %s763_s8  ;;  %p769_p13 = scmp.lt.s32.totalorder %s763_s8, %s763_s8 }
  0x1d   :  { %p770_p0 = por %p769_p13, %p768_p12 }
  0x1f   :  { %p771_p1 = pnand %p770_p0, %p764_p11 }
  0x21   :  { %774 = shalt.err (!%p771_p1)
}
  0x22   :  { %s829_s1 = smov 128   ;;  %s830_s9 = smov 8  }
  0x23   :  { %22 = dma.hbm_to_vmem [thread:$0]  %s910_s0, 2048, %s17_s27, [#allocation3], %s829_s1, %s829_s1, %s830_s9  }
  0x24   :  { %s831_s12 = smov [#allocation7]   ;;  %s775_s16 = scalar_lea.hbm %s912_s2, 2048 }
  0x25   :  { %s40_s13 = sshll.u32 %s831_s12, 4  ;;  %p776_p2 = scmp.ne.s32.totalorder %s912_s2, %s775_s16  ;;  %s41_s13 = int_to_ptr.vmem [resolvable:$true] %s40_s13 }
  0x26   :  { %p779_p3 = scmp.lt.u32.totalorder %s775_s16, %s912_s2 }
  0x28   :  { %p781_p4 = pnand %p779_p3, %p776_p2 }
  0x2a   :  { %784 = shalt.err (!%p781_p4)
}
  0x2b   :  { %s785_s21 = scalar_lea.vmem %s41_s13, 2048  ;;  %p790_p6 = scmp.lt.s32.totalorder %s41_s13, %s41_s13 }
  0x2c   :  { %p786_p5 = scmp.ne.s32.totalorder %s41_s13, %s785_s21  ;;  %p791_p7 = scmp.lt.s32.totalorder %s785_s21, %s785_s21 }
  0x2e   :  { %p792_p8 = por %p791_p7, %p790_p6 }
  0x30   :  { %p793_p9 = pnand %p792_p8, %p786_p5 }
  0x32   :  { %796 = shalt.err (!%p793_p9)
}
  0x33   :  { %46 = dma.hbm_to_vmem [thread:$0]  %s912_s2, 2048, %s41_s13, [#allocation6], %s829_s1, %s829_s1, %s830_s9  }
  0x34   :  { %819 = dma.done.wait [#allocation3], 2048  }
  0x35   :  { %820 = vsyncadd [#allocation3], 4294965248 }
  0x36   :  { %821 = dma.done.wait [#allocation6], 4096  }
  0x37   :  { %822 = vsyncadd [#allocation6], 4294963200  ;;  %v691_v0 = vld [vmem:[#allocation5 + $0x40] sm:$0xff]   ;;  %v693_v2 = vld [vmem:[#allocation5 + $0x48] sm:$0xff]   ;;  %s832_s2 = smov [#allocation8]  }
  0x38   :  { %v692_v1 = vld [vmem:[#allocation5] sm:$0xff]   ;;  %602 = vmatprep.subr.bf16.mxu0 %v691_v0  ;;  %666 = vmatprep.subr.bf16.mxu1 %v691_v0  ;;  %v694_v3 = vld [vmem:[#allocation5 + $0x8] sm:$0xff]   ;;  %v695_v4 = vld [vmem:[#allocation5 + $0x50] sm:$0xff]   ;;  %s555_s23 = sshll.u32 %s832_s2, 4  ;;  %s556_s23 = int_to_ptr.vmem [resolvable:$true] %s555_s23 }
  0x39   :  { %603 = vmatpush3.bf16.msra.mxu0 %v692_v1  ;;  %674 = vmatpush3.bf16.msra.mxu1 %v692_v1  ;;  %v696_v5 = vld [vmem:[#allocation5 + $0x10] sm:$0xff]   ;;  %v697_v6 = vld [vmem:[#allocation5 + $0x58] sm:$0xff]   ;;  %v699_v8 = vld [vmem:[#allocation5 + $0x60] sm:$0xff]   ;;  %s797_s24 = scalar_lea.vmem %s556_s23, 2048  ;;  %p802_p11 = scmp.lt.s32.totalorder %s556_s23, %s556_s23 }
  0x3a   :  { %604 = vmatprep.subr.bf16.mxu0 %v693_v2  ;;  %667 = vmatprep.subr.bf16.mxu1 %v693_v2  ;;  %v698_v7 = vld [vmem:[#allocation5 + $0x18] sm:$0xff]   ;;  %v700_v9 = vld [vmem:[#allocation5 + $0x20] sm:$0xff]   ;;  %v701_v10 = vld [vmem:[#allocation5 + $0x68] sm:$0xff]   ;;  %p798_p10 = scmp.ne.s32.totalorder %s556_s23, %s797_s24  ;;  %p803_p12 = scmp.lt.s32.totalorder %s797_s24, %s797_s24 }
  0x3b   :  { %v709_v11 = vld [vmem:[#allocation2 + $0x4] ss:$8 sps:$4 sm:$0xff]   ;;  %v703_v14 = vld [vmem:[#allocation5 + $0x70] sm:$0xff]   ;;  %v705_v16 = vld [vmem:[#allocation5 + $0x78] sm:$0xff]  }
  0x3c   :  { %v712_v12 = vld [vmem:[#allocation2 + $0x44] ss:$8 sps:$4 sm:$0xff]   ;;  %354 = vmatprep.mubr.bf16.mxu0 %v709_v11  ;;  %v704_v15 = vld [vmem:[#allocation5 + $0x30] sm:$0xff]   ;;  %v706_v17 = vld [vmem:[#allocation5 + $0x38] sm:$0xff]   ;;  %p804_p13 = por %p803_p12, %p802_p11 }
  0x3d   :  { %605 = vmatpush3.bf16.msra.mxu0 %v694_v3  ;;  %675 = vmatpush3.bf16.msra.mxu1 %v694_v3  ;;  %v702_v13 = vld [vmem:[#allocation5 + $0x28] sm:$0xff]   ;;  %v713_v20 = vld [vmem:[#allocation2 + $0x14] ss:$8 sps:$4 sm:$0xff]   ;;  %v717_v22 = vld [vmem:[#allocation2 + $0x10] ss:$8 sps:$4 sm:$0xff]  }
  0x3e   :  { %606 = vmatprep.subr.bf16.mxu0 %v695_v4  ;;  %668 = vmatprep.subr.bf16.mxu1 %v695_v4  ;;  %v707_v18 = vld [vmem:[#allocation2] ss:$8 sps:$4 sm:$0xff]   ;;  %v715_v21 = vld [vmem:[#allocation2 + $0x54] ss:$8 sps:$4 sm:$0xff]   ;;  %v718_v23 = vld [vmem:[#allocation2 + $0x50] ss:$8 sps:$4 sm:$0xff]   ;;  %p805_p0 = pnand %p804_p13, %p798_p10 }
  0x3f   :  { %386 = vmatprep.mubr.bf16.mxu1 %v712_v12  ;;  %v710_v19 = vld [vmem:[#allocation2 + $0x40] ss:$8 sps:$4 sm:$0xff]   ;;  %v719_v24 = vld [vmem:[#allocation2 + $0x24] ss:$8 sps:$4 sm:$0xff]   ;;  %v725_v28 = vld [vmem:[#allocation2 + $0x34] ss:$8 sps:$4 sm:$0xff]  }
  0x40   :  { %v721_v25 = vld [vmem:[#allocation2 + $0x64] ss:$8 sps:$4 sm:$0xff]   ;;  %v723_v26 = vld [vmem:[#allocation2 + $0x20] ss:$8 sps:$4 sm:$0xff]   ;;  %v727_v29 = vld [vmem:[#allocation2 + $0x74] ss:$8 sps:$4 sm:$0xff]  }
  0x41   :  { %607 = vmatpush3.bf16.msra.mxu0 %v696_v5  ;;  %676 = vmatpush3.bf16.msra.mxu1 %v696_v5  ;;  %v724_v27 = vld [vmem:[#allocation2 + $0x60] ss:$8 sps:$4 sm:$0xff]   ;;  %v729_v30 = vld [vmem:[#allocation2 + $0x30] ss:$8 sps:$4 sm:$0xff]  }
  0x42   :  { %608 = vmatprep.subr.bf16.mxu0 %v697_v6  ;;  %669 = vmatprep.subr.bf16.mxu1 %v697_v6  ;;  %v730_v31 = vld [vmem:[#allocation2 + $0x70] ss:$8 sps:$4 sm:$0xff]   ;;  %v486_v34 = vld [vmem:[#allocation7] sm:$0xff]  ;;  %v487_v42 = vld [vmem:[#allocation7 + $0x8] sm:$0xff] }
  0x43   :  { %v494_v35 = vld [vmem:[#allocation7 + $0x40] sm:$0xff]  ;;  %v495_v43 = vld [vmem:[#allocation7 + $0x48] sm:$0xff]  ;;  %v502_v44 = vmul.f32 0.15, %v486_v34  ;;  %v503_v50 = vmul.f32 0.15, %v487_v42 }
  0x44   :  { %v510_v45 = vmul.f32 0.15, %v494_v35  ;;  %v511_v51 = vmul.f32 0.15, %v495_v43  ;;  %v488_v54 = vld [vmem:[#allocation7 + $0x10] sm:$0xff]  ;;  %v489_v6 = vld [vmem:[#allocation7 + $0x18] sm:$0xff] }
  0x45   :  { %609 = vmatpush3.bf16.msra.mxu0 %v698_v7  ;;  %677 = vmatpush3.bf16.msra.mxu1 %v698_v7  ;;  %v496_v55 = vld [vmem:[#allocation7 + $0x50] sm:$0xff]  ;;  %v497_v7 = vld [vmem:[#allocation7 + $0x58] sm:$0xff]  ;;  %v491_v34 = vld [vmem:[#allocation7 + $0x28] sm:$0xff] }
  0x46   :  { %610 = vmatprep.subr.bf16.mxu0 %v699_v8  ;;  %670 = vmatprep.subr.bf16.mxu1 %v699_v8  ;;  %v504_v8 = vmul.f32 0.15, %v488_v54  ;;  %v499_v35 = vld [vmem:[#allocation7 + $0x68] sm:$0xff]  ;;  %v507_v42 = vmul.f32 0.15, %v491_v34 }
  0x47   :  { %v515_v43 = vmul.f32 0.15, %v499_v35 }
  0x49   :  { %611 = vmatpush3.bf16.msra.mxu0 %v700_v9  ;;  %678 = vmatpush3.bf16.msra.mxu1 %v700_v9  ;;  %v512_v9 = vmul.f32 0.15, %v496_v55 }
  0x4a   :  { %612 = vmatprep.subr.bf16.mxu0 %v701_v10  ;;  %671 = vmatprep.subr.bf16.mxu1 %v701_v10 }
  0x4d   :  { %613 = vmatpush3.bf16.msra.mxu0 %v702_v13  ;;  %679 = vmatpush3.bf16.msra.mxu1 %v702_v13 }
  0x4e   :  { %614 = vmatprep.subr.bf16.mxu0 %v703_v14  ;;  %672 = vmatprep.subr.bf16.mxu1 %v703_v14  ;;  %v505_v14 = vmul.f32 0.15, %v489_v6 }
  0x51   :  { %615 = vmatpush3.bf16.msra.mxu0 %v704_v15  ;;  %680 = vmatpush3.bf16.msra.mxu1 %v704_v15  ;;  %v513_v15 = vmul.f32 0.15, %v497_v7 }
  0x52   :  { %616 = vmatprep.subr.bf16.mxu0 %v705_v16  ;;  %673 = vmatprep.subr.bf16.mxu1 %v705_v16 }
  0x55   :  { %617 = vmatpush3.bf16.msra.mxu0 %v706_v17  ;;  %681 = vmatpush3.bf16.msra.mxu1 %v706_v17 }
  0x58   :  { %355 = vmatmul.mubr.bf16.vlgmr.msra.gmra.mrb[0].mxu0 %v707_v18  ;;  %387 = vmatmul.mubr.bf16.vlgmr.msra.gmra.mrb[0].mxu1 %v710_v19  ;;  %v490_v18 = vld [vmem:[#allocation7 + $0x20] sm:$0xff] }
  0x59   :  { %362 = vmatprep.mubr.bf16.mxu0 %v713_v20  ;;  %394 = vmatprep.mubr.bf16.mxu1 %v715_v21  ;;  %v498_v19 = vld [vmem:[#allocation7 + $0x60] sm:$0xff] }
  0x60   :  { %363 = vmatmul.mubr.bf16.gmra.mrb[4].mxu0 %v717_v22  ;;  %395 = vmatmul.mubr.bf16.gmra.mrb[4].mxu1 %v718_v23 }
  0x61   :  { %370 = vmatprep.mubr.bf16.mxu0 %v719_v24  ;;  %402 = vmatprep.mubr.bf16.mxu1 %v721_v25 }
  0x68   :  { %371 = vmatmul.mubr.bf16.gmra.mrb[8].mxu0 %v723_v26  ;;  %403 = vmatmul.mubr.bf16.gmra.mrb[8].mxu1 %v724_v27 }
  0x69   :  { %378 = vmatprep.mubr.bf16.mxu0 %v725_v28  ;;  %410 = vmatprep.mubr.bf16.mxu1 %v727_v29 }
  0x70   :  { %379 = vmatmul.mubr.bf16.gmra.mrb[12].mxu0 %v729_v30  ;;  %411 = vmatmul.mubr.bf16.gmra.mrb[12].mxu1 %v730_v31 }
 0x12b   :  { %v618_v32 = vpop.f32.mrb[0].mxu0  ;;  %v642_v33 = vpop.f32.mrb[0].mxu1 }
 0x12c   :  { %v619_v36 = vpop.f32.mrb[1].mxu0  ;;  %v643_v37 = vpop.f32.mrb[1].mxu1 }
 0x12d   :  { %v620_v38 = vadd.f32 %v619_v36, %v618_v32  ;;  %v644_v39 = vadd.f32 %v643_v37, %v642_v33  ;;  %v621_v40 = vpop.f32.mrb[2].mxu0  ;;  %v645_v41 = vpop.f32.mrb[2].mxu1  ;;  %v506_v36 = vmul.f32 0.15, %v490_v18  ;;  %v514_v37 = vmul.f32 0.15, %v498_v19 }
 0x12e   :  { %v622_v46 = vpop.f32.mrb[3].mxu0  ;;  %v646_v47 = vpop.f32.mrb[3].mxu1 }
 0x12f   :  { %v623_v48 = vadd.f32 %v622_v46, %v621_v40  ;;  %v647_v49 = vadd.f32 %v646_v47, %v645_v41  ;;  %v470_v52 = vmul.f32 0.85, %v620_v38  ;;  %v478_v53 = vmul.f32 0.85, %v644_v39  ;;  %v492_v46 = vld [vmem:[#allocation7 + $0x30] sm:$0xff] }
 0x130   :  { %v500_v47 = vld [vmem:[#allocation7 + $0x70] sm:$0xff] }
 0x131   :  { %v518_v56 = vadd.f32 %v502_v44, %v470_v52  ;;  %v526_v57 = vadd.f32 %v510_v45, %v478_v53  ;;  %v471_v58 = vmul.f32 0.85, %v623_v48  ;;  %v479_v59 = vmul.f32 0.85, %v647_v49 }
 0x133   :  { %v624_v60 = vpop.f32.mrb[4].mxu0  ;;  %v648_v61 = vpop.f32.mrb[4].mxu1  ;;  %534 = vst [vmem:[#allocation8] sm:$0xff] %v518_v56  ;;  %542 = vst [vmem:[#allocation8 + $0x40] sm:$0xff] %v526_v57  ;;  %v519_v0 = vadd.f32 %v503_v50, %v471_v58  ;;  %v527_v1 = vadd.f32 %v511_v51, %v479_v59 }
 0x134   :  { %v625_v62 = vpop.f32.mrb[5].mxu0  ;;  %v649_v63 = vpop.f32.mrb[5].mxu1 }
 0x135   :  { %v626_v2 = vadd.f32 %v625_v62, %v624_v60  ;;  %v650_v3 = vadd.f32 %v649_v63, %v648_v61  ;;  %v627_v4 = vpop.f32.mrb[6].mxu0  ;;  %v651_v5 = vpop.f32.mrb[6].mxu1  ;;  %535 = vst [vmem:[#allocation8 + $0x8] sm:$0xff] %v519_v0  ;;  %543 = vst [vmem:[#allocation8 + $0x48] sm:$0xff] %v527_v1  ;;  %v493_v62 = vld [vmem:[#allocation7 + $0x38] sm:$0xff] }
 0x136   :  { %v628_v10 = vpop.f32.mrb[7].mxu0  ;;  %v652_v11 = vpop.f32.mrb[7].mxu1  ;;  %v501_v63 = vld [vmem:[#allocation7 + $0x78] sm:$0xff]  ;;  %v508_v0 = vmul.f32 0.15, %v492_v46 }
 0x137   :  { %v629_v12 = vadd.f32 %v628_v10, %v627_v4  ;;  %v653_v13 = vadd.f32 %v652_v11, %v651_v5  ;;  %v472_v16 = vmul.f32 0.85, %v626_v2  ;;  %v480_v17 = vmul.f32 0.85, %v650_v3 }
 0x138   :  { %v516_v1 = vmul.f32 0.15, %v500_v47  ;;  %v509_v6 = vmul.f32 0.15, %v493_v62  ;;  %v517_v7 = vmul.f32 0.15, %v501_v63 }
 0x139   :  { %v520_v20 = vadd.f32 %v504_v8, %v472_v16  ;;  %v528_v21 = vadd.f32 %v512_v9, %v480_v17  ;;  %v473_v22 = vmul.f32 0.85, %v629_v12  ;;  %v481_v23 = vmul.f32 0.85, %v653_v13 }
 0x13b   :  { %v630_v24 = vpop.f32.mrb[8].mxu0  ;;  %v654_v25 = vpop.f32.mrb[8].mxu1  ;;  %536 = vst [vmem:[#allocation8 + $0x10] sm:$0xff] %v520_v20  ;;  %544 = vst [vmem:[#allocation8 + $0x50] sm:$0xff] %v528_v21  ;;  %v521_v28 = vadd.f32 %v505_v14, %v473_v22  ;;  %v529_v29 = vadd.f32 %v513_v15, %v481_v23 }
 0x13c   :  { %v631_v26 = vpop.f32.mrb[9].mxu0  ;;  %v655_v27 = vpop.f32.mrb[9].mxu1 }
 0x13d   :  { %v632_v30 = vadd.f32 %v631_v26, %v630_v24  ;;  %v656_v31 = vadd.f32 %v655_v27, %v654_v25  ;;  %v633_v32 = vpop.f32.mrb[10].mxu0  ;;  %v657_v33 = vpop.f32.mrb[10].mxu1  ;;  %537 = vst [vmem:[#allocation8 + $0x18] sm:$0xff] %v521_v28  ;;  %545 = vst [vmem:[#allocation8 + $0x58] sm:$0xff] %v529_v29 }
 0x13e   :  { %v634_v38 = vpop.f32.mrb[11].mxu0  ;;  %v658_v39 = vpop.f32.mrb[11].mxu1 }
 0x13f   :  { %v635_v40 = vadd.f32 %v634_v38, %v633_v32  ;;  %v659_v41 = vadd.f32 %v658_v39, %v657_v33  ;;  %v474_v44 = vmul.f32 0.85, %v632_v30  ;;  %v482_v45 = vmul.f32 0.85, %v656_v31 }
 0x141   :  { %v522_v48 = vadd.f32 %v506_v36, %v474_v44  ;;  %v530_v49 = vadd.f32 %v514_v37, %v482_v45  ;;  %v475_v50 = vmul.f32 0.85, %v635_v40  ;;  %v483_v51 = vmul.f32 0.85, %v659_v41 }
 0x143   :  { %v636_v52 = vpop.f32.mrb[12].mxu0  ;;  %v660_v53 = vpop.f32.mrb[12].mxu1  ;;  %538 = vst [vmem:[#allocation8 + $0x20] sm:$0xff] %v522_v48  ;;  %546 = vst [vmem:[#allocation8 + $0x60] sm:$0xff] %v530_v49  ;;  %v523_v56 = vadd.f32 %v507_v42, %v475_v50  ;;  %v531_v57 = vadd.f32 %v515_v43, %v483_v51 }
 0x144   :  { %v637_v54 = vpop.f32.mrb[13].mxu0  ;;  %v661_v55 = vpop.f32.mrb[13].mxu1 }
 0x145   :  { %v638_v58 = vadd.f32 %v637_v54, %v636_v52  ;;  %v662_v59 = vadd.f32 %v661_v55, %v660_v53  ;;  %v639_v60 = vpop.f32.mrb[14].mxu0  ;;  %v663_v61 = vpop.f32.mrb[14].mxu1  ;;  %539 = vst [vmem:[#allocation8 + $0x28] sm:$0xff] %v523_v56  ;;  %547 = vst [vmem:[#allocation8 + $0x68] sm:$0xff] %v531_v57 }
 0x146   :  { %v640_v2 = vpop.f32.mrb[15].mxu0  ;;  %v664_v3 = vpop.f32.mrb[15].mxu1 }
 0x147   :  { %v641_v4 = vadd.f32 %v640_v2, %v639_v60  ;;  %v665_v5 = vadd.f32 %v664_v3, %v663_v61  ;;  %v476_v8 = vmul.f32 0.85, %v638_v58  ;;  %v484_v9 = vmul.f32 0.85, %v662_v59 }
 0x149   :  { %v524_v10 = vadd.f32 %v508_v0, %v476_v8  ;;  %v532_v11 = vadd.f32 %v516_v1, %v484_v9  ;;  %v477_v12 = vmul.f32 0.85, %v641_v4  ;;  %v485_v13 = vmul.f32 0.85, %v665_v5 }
 0x14b   :  { %540 = vst [vmem:[#allocation8 + $0x30] sm:$0xff] %v524_v10  ;;  %548 = vst [vmem:[#allocation8 + $0x70] sm:$0xff] %v532_v11  ;;  %v525_v14 = vadd.f32 %v509_v6, %v477_v12  ;;  %v533_v15 = vadd.f32 %v517_v7, %v485_v13 }
 0x14d   :  { %541 = vst [vmem:[#allocation8 + $0x38] sm:$0xff] %v525_v14  ;;  %549 = vst [vmem:[#allocation8 + $0x78] sm:$0xff] %v533_v15 }
 0x14e   :  { %808 = shalt.err (!%p805_p0)
}
 0x14f   :  { %s809_s27 = scalar_lea.hbm %s913_s3, 2048 }
 0x150   :  { %p810_p1 = scmp.ne.s32.totalorder %s913_s3, %s809_s27  ;;  %p813_p2 = scmp.lt.u32.totalorder %s809_s27, %s913_s3 }
 0x152   :  { %p815_p3 = pnand %p813_p2, %p810_p1 }
 0x154   :  { %818 = shalt.err (!%p815_p3)
}
 0x155   :  { %561 = dma.vmem_to_hbm [thread:$0]  %s556_s23, 2048, %s913_s3, [#allocation4], %s829_s1, %s829_s1, %s830_s9  }
 0x156   :  { %823 = dma.done.wait [#allocation4], 2048  }
 0x157   :  { %824 = vsyncadd [#allocation4], 4294965248 }
 0x158   :  { %565 = vsyncpa [#allocation3], 1 }
 0x159   :  { %566 = vsyncpa [#allocation6], 1 }
 0x15a   :  { %567 = vsyncpa [#allocation4], 1 }

</bundles_post_ra>
